<compile_context>
chip_gen: v6e
topology: v6e:2x2x1
jax: 0.10.0
libtpu: 0.0.40
codegen_flags: <defaults>
</compile_context>

<pallas_src>
import functools

import jax
import jax.numpy as jnp
from jax.experimental import pallas as pl
from jax.experimental.pallas import tpu as pltpu

_LANE = 128           # lane width: feature dims padded to multiples of this
_TM_MAX = 512         # max activation-tile rows (fits easily in VMEM on v5e/v6e/v7x)
_VMEM_LIMIT = 48 * 1024 * 1024   # < 64 MiB physical VMEM on v7x; fine on v5e/v6e


def _round_up(x, m):
    return ((x + m - 1) // m) * m


def _mlp_kernel(nlayers, x_ref, *refs):
    """Fused MLP over one [TM, din_pad] activation tile.

    refs = (w0, b0, w1, b1, ..., w{L-1}, b{L-1}, o_ref).
    Weights are bf16 (in_pad, out_pad), biases f32 (1, out_pad); both are
    VMEM-resident across all grid steps (constant index_map). Accumulation is
    f32 on the MXU via preferred_element_type.
    """
    o_ref = refs[-1]
    param_refs = refs[:-1]

    h = x_ref[...]                              # bf16 [TM, din_pad]
    acc = None
    for layer in range(nlayers):
        w = param_refs[2 * layer][...]          # bf16 (in_pad, out_pad)
        b = param_refs[2 * layer + 1][...]      # f32  (1, out_pad)
        acc = jnp.dot(h, w, preferred_element_type=jnp.float32) + b
        if layer < nlayers - 1:
            acc = jnp.maximum(acc, 0.0)         # ReLU in f32
            h = acc.astype(jnp.bfloat16)        # bf16 operand for next MXU pass
            # TODO(synk): F.dropout(training=True) not implemented; kernel runs in
            # inference mode (dropout == identity), matching model.eval().
    o_ref[...] = acc.astype(o_ref.dtype)


def prepare_params(params):
    """One-time parameter prep (hoisted out of the per-call hot path).

    - transpose nn.Linear weights (out, in) -> (in, out) for plain MXU matmuls
    - zero-pad every feature dim up to a multiple of 128 (lane-dense tiles)
    - cast weights to bf16 (MXU operands); keep biases f32 (added to f32 acc)

    Returns (flat_params, ninput, noutput):
      flat_params = (w0, b0, w1, b1, ...) padded/casted arrays
      ninput/noutput = original (unpadded) feature sizes.
    """
    flat = []
    for w, b in params:
        w = jnp.asarray(w, jnp.float32)
        b = jnp.asarray(b, jnp.float32)
        fan_out, fan_in = w.shape
        in_pad = _round_up(fan_in, _LANE)
        out_pad = _round_up(fan_out, _LANE)
        w_t = jnp.pad(w.T, ((0, in_pad - fan_in), (0, out_pad - fan_out)))
        flat.append(w_t.astype(jnp.bfloat16))
        flat.append(jnp.pad(b, (0, out_pad - fan_out)).reshape(1, out_pad))
    ninput = params[0][0].shape[1]
    noutput = params[-1][0].shape[0]
    return tuple(flat), ninput, noutput


@functools.partial(jax.jit, static_argnums=(2, 3))
def mlp_forward(x, flat_params, ninput, noutput):
    """x: [..., anything] with total size divisible by ninput (PyTorch view(-1, ninput))."""
    x2d = x.reshape(-1, ninput).astype(jnp.float32)
    n = x2d.shape[0]
    nlayers = len(flat_params) // 2
    din_pad = flat_params[0].shape[0]
    dout_pad = flat_params[-2].shape[1]

    # Batch tile: as large as useful, multiple of 128 rows (keeps MXU M-dim full).
    tm = min(_TM_MAX, _round_up(max(n, 1), _LANE))
    n_pad = _round_up(n, tm)

    # Zero-pad rows (grid divisibility) and feature columns (lane-dense), cast to bf16.
    x_pad = jnp.pad(x2d, ((0, n_pad - n), (0, din_pad - ninput))).astype(jnp.bfloat16)

    grid = (n_pad // tm,)
    in_specs = [pl.BlockSpec((tm, din_pad), lambda i: (i, 0))]
    for p in flat_params:
        # Constant index map -> parameter DMA'd once, VMEM-resident across grid steps.
        in_specs.append(pl.BlockSpec(p.shape, lambda i: (0, 0)))
    out_spec = pl.BlockSpec((tm, dout_pad), lambda i: (i, 0))

    # Advisory cost estimate for XLA scheduling.
    flops = 0
    bytes_accessed = x_pad.size * 2 + n_pad * dout_pad * 4
    for layer in range(nlayers):
        w = flat_params[2 * layer]
        b = flat_params[2 * layer + 1]
        flops += 2 * n_pad * w.shape[0] * w.shape[1]
        bytes_accessed += w.size * 2 + b.size * 4

    out_pad_arr = pl.pallas_call(
        functools.partial(_mlp_kernel, nlayers),
        out_shape=jax.ShapeDtypeStruct((n_pad, dout_pad), jnp.float32),
        grid=grid,
        in_specs=in_specs,
        out_specs=out_spec,
        compiler_params=pltpu.CompilerParams(
            dimension_semantics=("parallel",),      # megacore sharding on v7x
            vmem_limit_bytes=_VMEM_LIMIT,
        ),
        cost_estimate=pl.CostEstimate(
            flops=flops, transcendentals=0, bytes_accessed=bytes_accessed),
    )(x_pad, *flat_params)

    return out_pad_arr[:n, :noutput]


def init_mlp_params(key, ninput, nh, noutput, nlayers):
    """Deterministic synthetic init; shapes follow nn.Linear (out, in)."""
    dims = []
    if nlayers == 1:
        dims.append((ninput, noutput))
    else:
        dims.append((ninput, nh))
        for _ in range(nlayers - 2):
            dims.append((nh, nh))
        dims.append((nh, noutput))

    params = []
    for (fan_in, fan_out) in dims:
        key, kw, kb = jax.random.split(key, 3)
        bound = 1.0 / (fan_in ** 0.5)
        w = jax.random.uniform(kw, (fan_out, fan_in), jnp.float32, -bound, bound)
        b = jax.random.uniform(kb, (fan_out,), jnp.float32, -bound, bound)
        params.append((w, b))
    return params


def reference_forward(x, params):
    """Pure-JAX f32 reference of the PyTorch forward (eval mode)."""
    ninput = params[0][0].shape[1]
    h = x.reshape(-1, ninput)
    for i, (w, b) in enumerate(params):
        h = h @ w.T + b
        if i < len(params) - 1:
            h = jnp.maximum(h, 0.0)
    return h


if __name__ == "__main__":
    ninput, nh, noutput, nlayers = 32, 64, 16, 3
    key = jax.random.PRNGKey(0)
    kx, kx2, kp = jax.random.split(key, 3)

    params = init_mlp_params(kp, ninput, nh, noutput, nlayers)
    flat_params, din, dout = prepare_params(params)   # one-time prep (transposes/pad/cast)

    # Small case: [batch=2, groups=4, ninput=32] -> flattened to [8, 32] inside.
    x = jax.random.normal(kx, (2, 4, ninput), jnp.float32)
    out = mlp_forward(x, flat_params, din, dout)
    out = jax.block_until_ready(out)
    ref = reference_forward(x, params)
    assert out.shape == (8, noutput), out.shape
    # bf16 MXU operands -> looser tolerance than pure-f32.
    assert jnp.allclose(out, ref, atol=5e-2, rtol=5e-2), "mismatch vs reference (small)"

    # Larger case exercising a multi-step grid with N not divisible by the tile.
    x_big = jax.random.normal(kx2, (16, 80, ninput), jnp.float32)   # N = 1280 rows
    out_big = jax.block_until_ready(mlp_forward(x_big, flat_params, din, dout))
    ref_big = reference_forward(x_big, params)
    assert out_big.shape == (1280, noutput), out_big.shape
    assert jnp.allclose(out_big, ref_big, atol=5e-2, rtol=5e-2), "mismatch vs reference (big)"

    print("KERNEL_OK")
</pallas_src>

<mosaic_0001>
module attributes {stable_mosaic.version = 11 : i64} {
  func.func @_mlp_kernel(%arg0: i32, %arg1: memref<128x128xbf16, #tpu.memory_space<vmem>>, %arg2: memref<128x128xbf16, #tpu.memory_space<vmem>>, %arg3: memref<1x128xf32, #tpu.memory_space<vmem>>, %arg4: memref<128x128xbf16, #tpu.memory_space<vmem>>, %arg5: memref<1x128xf32, #tpu.memory_space<vmem>>, %arg6: memref<128x128xbf16, #tpu.memory_space<vmem>>, %arg7: memref<1x128xf32, #tpu.memory_space<vmem>>, %arg8: memref<128x128xf32, #tpu.memory_space<vmem>>) attributes {dimension_semantics = [#tpu.dimension_semantics<parallel>], iteration_bounds = array<i64: 1>, scalar_prefetch = 0 : i64, scratch_operands = 0 : i64, tpu.core_type = #tpu.core_type<tc>, window_params = [{transform_indices = @transform_0, window_bounds = array<i64: 128, 128>}, {pipeline_mode = #tpu.pipeline_mode<synchronous>, transform_indices = @transform_1, window_bounds = array<i64: 128, 128>}, {pipeline_mode = #tpu.pipeline_mode<synchronous>, transform_indices = @transform_2, window_bounds = array<i64: 1, 128>}, {pipeline_mode = #tpu.pipeline_mode<synchronous>, transform_indices = @transform_3, window_bounds = array<i64: 128, 128>}, {pipeline_mode = #tpu.pipeline_mode<synchronous>, transform_indices = @transform_4, window_bounds = array<i64: 1, 128>}, {pipeline_mode = #tpu.pipeline_mode<synchronous>, transform_indices = @transform_5, window_bounds = array<i64: 128, 128>}, {pipeline_mode = #tpu.pipeline_mode<synchronous>, transform_indices = @transform_6, window_bounds = array<i64: 1, 128>}, {transform_indices = @transform_7, window_bounds = array<i64: 128, 128>}]} {
    %c0 = arith.constant 0 : index
    %c0_0 = arith.constant 0 : index
    %0 = vector.load %arg1[%c0, %c0_0] : memref<128x128xbf16, #tpu.memory_space<vmem>>, vector<128x128xbf16>
    %c0_1 = arith.constant 0 : index
    %c0_2 = arith.constant 0 : index
    %1 = vector.load %arg2[%c0_1, %c0_2] : memref<128x128xbf16, #tpu.memory_space<vmem>>, vector<128x128xbf16>
    %c0_3 = arith.constant 0 : index
    %c0_4 = arith.constant 0 : index
    %2 = vector.load %arg3[%c0_3, %c0_4] : memref<1x128xf32, #tpu.memory_space<vmem>>, vector<1x128xf32>
    %cst = arith.constant dense<0.000000e+00> : vector<128x128xf32>
    %3 = tpu.matmul %0, %1, %cst {dimension_numbers = #tpu.dot_dimension_numbers<[1], [0], [0], [1], [0, 0, 1, 1], [], []>} : vector<128x128xbf16>, vector<128x128xbf16>, vector<128x128xf32> -> vector<128x128xf32>
    %4 = vector.broadcast %2 : vector<1x128xf32> to vector<128x128xf32>
    %5 = arith.addf %3, %4 : vector<128x128xf32>
    %cst_5 = arith.constant 0.000000e+00 : f32
    %6 = vector.broadcast %cst_5 : f32 to vector<128x128xf32>
    %7 = arith.maximumf %5, %6 : vector<128x128xf32>
    %8 = arith.truncf %7 : vector<128x128xf32> to vector<128x128xbf16>
    %c0_6 = arith.constant 0 : index
    %c0_7 = arith.constant 0 : index
    %9 = vector.load %arg4[%c0_6, %c0_7] : memref<128x128xbf16, #tpu.memory_space<vmem>>, vector<128x128xbf16>
    %c0_8 = arith.constant 0 : index
    %c0_9 = arith.constant 0 : index
    %10 = vector.load %arg5[%c0_8, %c0_9] : memref<1x128xf32, #tpu.memory_space<vmem>>, vector<1x128xf32>
    %cst_10 = arith.constant dense<0.000000e+00> : vector<128x128xf32>
    %11 = tpu.matmul %8, %9, %cst_10 {dimension_numbers = #tpu.dot_dimension_numbers<[1], [0], [0], [1], [0, 0, 1, 1], [], []>} : vector<128x128xbf16>, vector<128x128xbf16>, vector<128x128xf32> -> vector<128x128xf32>
    %12 = vector.broadcast %10 : vector<1x128xf32> to vector<128x128xf32>
    %13 = arith.addf %11, %12 : vector<128x128xf32>
    %cst_11 = arith.constant 0.000000e+00 : f32
    %14 = vector.broadcast %cst_11 : f32 to vector<128x128xf32>
    %15 = arith.maximumf %13, %14 : vector<128x128xf32>
    %16 = arith.truncf %15 : vector<128x128xf32> to vector<128x128xbf16>
    %c0_12 = arith.constant 0 : index
    %c0_13 = arith.constant 0 : index
    %17 = vector.load %arg6[%c0_12, %c0_13] : memref<128x128xbf16, #tpu.memory_space<vmem>>, vector<128x128xbf16>
    %c0_14 = arith.constant 0 : index
    %c0_15 = arith.constant 0 : index
    %18 = vector.load %arg7[%c0_14, %c0_15] : memref<1x128xf32, #tpu.memory_space<vmem>>, vector<1x128xf32>
    %cst_16 = arith.constant dense<0.000000e+00> : vector<128x128xf32>
    %19 = tpu.matmul %16, %17, %cst_16 {dimension_numbers = #tpu.dot_dimension_numbers<[1], [0], [0], [1], [0, 0, 1, 1], [], []>} : vector<128x128xbf16>, vector<128x128xbf16>, vector<128x128xf32> -> vector<128x128xf32>
    %20 = vector.broadcast %18 : vector<1x128xf32> to vector<128x128xf32>
    %21 = arith.addf %19, %20 : vector<128x128xf32>
    %c0_17 = arith.constant 0 : index
    %c0_18 = arith.constant 0 : index
    %22 = vector.load %arg8[%c0_17, %c0_18] : memref<128x128xf32, #tpu.memory_space<vmem>>, vector<128x128xf32>
    tpu.vector_store %arg8[%c0_17, %c0_18], %21 {strides = array<i32>} : memref<128x128xf32, #tpu.memory_space<vmem>>, vector<128x128xf32>,
    return
  }
  func.func @transform_0(%arg0: i32) -> (i32, i32) {
    %c0_i32 = arith.constant 0 : i32
    %c0_i32_0 = arith.constant 0 : i32
    return %arg0, %c0_i32 : i32, i32
  }
  func.func @transform_1(%arg0: i32) -> (i32, i32) {
    %c0_i32 = arith.constant 0 : i32
    %c0_i32_0 = arith.constant 0 : i32
    %c0_i32_1 = arith.constant 0 : i32
    return %c0_i32, %c0_i32_0 : i32, i32
  }
  func.func @transform_2(%arg0: i32) -> (i32, i32) {
    %c0_i32 = arith.constant 0 : i32
    %c0_i32_0 = arith.constant 0 : i32
    %c0_i32_1 = arith.constant 0 : i32
    return %c0_i32, %c0_i32_0 : i32, i32
  }
  func.func @transform_3(%arg0: i32) -> (i32, i32) {
    %c0_i32 = arith.constant 0 : i32
    %c0_i32_0 = arith.constant 0 : i32
    %c0_i32_1 = arith.constant 0 : i32
    return %c0_i32, %c0_i32_0 : i32, i32
  }
  func.func @transform_4(%arg0: i32) -> (i32, i32) {
    %c0_i32 = arith.constant 0 : i32
    %c0_i32_0 = arith.constant 0 : i32
    %c0_i32_1 = arith.constant 0 : i32
    return %c0_i32, %c0_i32_0 : i32, i32
  }
  func.func @transform_5(%arg0: i32) -> (i32, i32) {
    %c0_i32 = arith.constant 0 : i32
    %c0_i32_0 = arith.constant 0 : i32
    %c0_i32_1 = arith.constant 0 : i32
    return %c0_i32, %c0_i32_0 : i32, i32
  }
  func.func @transform_6(%arg0: i32) -> (i32, i32) {
    %c0_i32 = arith.constant 0 : i32
    %c0_i32_0 = arith.constant 0 : i32
    %c0_i32_1 = arith.constant 0 : i32
    return %c0_i32, %c0_i32_0 : i32, i32
  }
  func.func @transform_7(%arg0: i32) -> (i32, i32) {
    %c0_i32 = arith.constant 0 : i32
    %c0_i32_0 = arith.constant 0 : i32
    return %arg0, %c0_i32 : i32, i32
  }
}

</mosaic_0001>

<bundles_post_ra>
// kernel: mlp_forward.1
= control target key start
LH: loop header
LB: loop body
LE: loop exit
PB: predicated region body
PF: predicated region fallthrough
CT: control target
= control target key end

     0   :  { %12 = vsyncpa [#allocation3], 0  ;;  %s1129_s0 = inlined_call_operand.vmem [shape: bf16[128,128], index: 0, kind: input, shape index: {}]   ;;  %s1130_s1 = inlined_call_operand.vmem [shape: bf16[128,128], index: 1, kind: input, shape index: {}]   ;;  %s1131_s2 = inlined_call_operand.vmem [shape: f32[1,128], index: 2, kind: input, shape index: {}]   ;;  %s1132_s3 = inlined_call_operand.hbm [shape: bf16[128,128], index: 3, kind: input, shape index: {}]   ;;  %s1133_s4 = inlined_call_operand.vmem [shape: f32[1,128], index: 4, kind: input, shape index: {}]   ;;  %s1134_s5 = inlined_call_operand.hbm [shape: bf16[128,128], index: 5, kind: input, shape index: {}]   ;;  %s1135_s6 = inlined_call_operand.vmem [shape: f32[1,128], index: 6, kind: input, shape index: {}]   ;;  %s1136_s7 = inlined_call_operand.vmem [shape: f32[128,128], index: 7, kind: output, shape index: {}]  }
   0x1   :  { %13 = vsyncpa [#allocation5], 0  ;;  %s968_s24 = smov [#allocation2]  }
   0x2   :  { %s25_s25 = sshll.u32 %s968_s24, 4  ;;  %s26_s25 = int_to_ptr.vmem [resolvable:$true] %s25_s25 }
   0x3   :  { %s932_s26 = scalar_lea.vmem %s26_s25, 1024  ;;  %p937_p1 = scmp.lt.s32.totalorder %s26_s25, %s26_s25 }
   0x4   :  { %p933_p0 = scmp.ne.s32.totalorder %s26_s25, %s932_s26  ;;  %p938_p2 = scmp.lt.s32.totalorder %s932_s26, %s932_s26 }
   0x6   :  { %p939_p3 = por %p938_p2, %p937_p1 }
   0x8   :  { %p940_p4 = pnand %p939_p3, %p933_p0 }
   0xa   :  { %943 = shalt.err (!%p940_p4)
}
   0xb   :  { %s969_s27 = smov 64   ;;  %s970_s28 = smov 4  }
   0xc   :  { %31 = dma.hbm_to_vmem [thread:$0]  %s1132_s3, 1024, %s26_s25, [#allocation3], %s969_s27, %s969_s27, %s970_s28  }
   0xd   :  { %s971_s8 = smov [#allocation4]  }
   0xe   :  { %s39_s9 = sshll.u32 %s971_s8, 4  ;;  %s40_s9 = int_to_ptr.vmem [resolvable:$true] %s39_s9 }
   0xf   :  { %s952_s10 = scalar_lea.vmem %s40_s9, 1024  ;;  %p957_p6 = scmp.lt.s32.totalorder %s40_s9, %s40_s9 }
  0x10   :  { %p953_p5 = scmp.ne.s32.totalorder %s40_s9, %s952_s10  ;;  %p958_p7 = scmp.lt.s32.totalorder %s952_s10, %s952_s10 }
  0x12   :  { %p959_p8 = por %p958_p7, %p957_p6 }
  0x14   :  { %p960_p9 = pnand %p959_p8, %p953_p5 }
  0x16   :  { %963 = shalt.err (!%p960_p9)
}
  0x17   :  { %45 = dma.hbm_to_vmem [thread:$0]  %s1134_s5, 1024, %s40_s9, [#allocation5], %s969_s27, %s969_s27, %s970_s28  }
  0x18   :  { %964 = dma.done.wait [#allocation3], 1024  }
  0x19   :  { %965 = vsyncadd [#allocation3], 4294966272 }
  0x1a   :  { %966 = dma.done.wait [#allocation5], 1024  }
  0x1b   :  { %967 = vsyncadd [#allocation5], 4294966272  ;;  %v892_v0 = vld [vmem:[%s1130_s1 + $0x38] sm:$0xff]   ;;  %v893_v1 = vld [vmem:[%s1130_s1 + $0x30] sm:$0xff]  }
  0x1c   :  { %776 = vmatprep.subr.bf16.mxu0 %v892_v0  ;;  %v894_v2 = vld [vmem:[%s1130_s1 + $0x28] sm:$0xff]   ;;  %v895_v3 = vld [vmem:[%s1130_s1 + $0x20] sm:$0xff]   ;;  %v896_v5 = vld [vmem:[%s1130_s1 + $0x18] sm:$0xff]  }
  0x1d   :  { %777 = vmatpush3.bf16.msra.mxu0 %v892_v0  ;;  %v900_v4 = vld [vmem:[%s1129_s0] sm:$0xff]   ;;  %v897_v6 = vld [vmem:[%s1130_s1 + $0x10] sm:$0xff]   ;;  %v908_v7 = vld [vmem:[#allocation2 + $0x38] sm:$0xff]  }
  0x1e   :  { %778 = vmatprep.subr.bf16.mxu0 %v893_v1  ;;  %792 = vmatprep.mubr.bf16.mxu0 %v900_v4  ;;  %v909_v8 = vld [vmem:[#allocation2 + $0x30] sm:$0xff]   ;;  %v898_v9 = vld [vmem:[%s1130_s1 + $0x8] sm:$0xff]   ;;  %v899_v11 = vld [vmem:[%s1130_s1] sm:$0xff]  }
  0x1f   :  { %808 = vmatprep.subr.bf16.mxu1 %v908_v7  ;;  %v910_v10 = vld [vmem:[#allocation2 + $0x28] sm:$0xff]   ;;  %v911_v12 = vld [vmem:[#allocation2 + $0x20] sm:$0xff]   ;;  %v912_v13 = vld [vmem:[#allocation2 + $0x18] sm:$0xff]  }
  0x20   :  { %809 = vmatpush3.bf16.msra.mxu1 %v908_v7  ;;  %v901_v14 = vld [vmem:[%s1129_s0 + $0x8] sm:$0xff]   ;;  %v902_v15 = vld [vmem:[%s1129_s0 + $0x10] sm:$0xff]   ;;  %v903_v16 = vld [vmem:[%s1129_s0 + $0x18] sm:$0xff]  }
  0x21   :  { %779 = vmatpush3.bf16.msra.mxu0 %v893_v1  ;;  %810 = vmatprep.subr.bf16.mxu1 %v909_v8  ;;  %v904_v17 = vld [vmem:[%s1129_s0 + $0x20] sm:$0xff]   ;;  %v905_v18 = vld [vmem:[%s1129_s0 + $0x28] sm:$0xff]   ;;  %v906_v19 = vld [vmem:[%s1129_s0 + $0x30] sm:$0xff]  }
  0x22   :  { %780 = vmatprep.subr.bf16.mxu0 %v894_v2  ;;  %v907_v20 = vld [vmem:[%s1129_s0 + $0x38] sm:$0xff]   ;;  %v913_v21 = vld [vmem:[#allocation2 + $0x10] sm:$0xff]   ;;  %v914_v22 = vld [vmem:[#allocation2 + $0x8] sm:$0xff]  }
  0x23   :  { %v915_v23 = vld [vmem:[#allocation2] sm:$0xff]   ;;  %v916_v24 = vld [vmem:[#allocation4 + $0x38] sm:$0xff]   ;;  %v917_v25 = vld [vmem:[#allocation4 + $0x30] sm:$0xff]  }
  0x24   :  { %811 = vmatpush3.bf16.msra.mxu1 %v909_v8  ;;  %v918_v26 = vld [vmem:[#allocation4 + $0x28] sm:$0xff]   ;;  %v919_v27 = vld [vmem:[#allocation4 + $0x20] sm:$0xff]   ;;  %v1066_v28 = vld [vmem:[#allocation4 + $0x18] sm:$0xff]  }
  0x25   :  { %781 = vmatpush3.bf16.msra.mxu0 %v894_v2  ;;  %812 = vmatprep.subr.bf16.mxu1 %v910_v10  ;;  %v693_v31 = vld [vmem:[%s1131_s2] ss:$0 sm:$0xff] }
  0x26   :  { %782 = vmatprep.subr.bf16.mxu0 %v895_v3 }
  0x28   :  { %813 = vmatpush3.bf16.msra.mxu1 %v910_v10 }
  0x29   :  { %783 = vmatpush3.bf16.msra.mxu0 %v895_v3  ;;  %814 = vmatprep.subr.bf16.mxu1 %v911_v12 }
  0x2a   :  { %784 = vmatprep.subr.bf16.mxu0 %v896_v5 }
  0x2c   :  { %815 = vmatpush3.bf16.msra.mxu1 %v911_v12 }
  0x2d   :  { %785 = vmatpush3.bf16.msra.mxu0 %v896_v5  ;;  %816 = vmatprep.subr.bf16.mxu1 %v912_v13 }
  0x2e   :  { %786 = vmatprep.subr.bf16.mxu0 %v897_v6 }
  0x30   :  { %817 = vmatpush3.bf16.msra.mxu1 %v912_v13 }
  0x31   :  { %787 = vmatpush3.bf16.msra.mxu0 %v897_v6  ;;  %818 = vmatprep.subr.bf16.mxu1 %v913_v21 }
  0x32   :  { %788 = vmatprep.subr.bf16.mxu0 %v898_v9 }
  0x34   :  { %819 = vmatpush3.bf16.msra.mxu1 %v913_v21 }
  0x35   :  { %789 = vmatpush3.bf16.msra.mxu0 %v898_v9  ;;  %820 = vmatprep.subr.bf16.mxu1 %v914_v22 }
  0x36   :  { %790 = vmatprep.subr.bf16.mxu0 %v899_v11 }
  0x38   :  { %821 = vmatpush3.bf16.msra.mxu1 %v914_v22  ;;  %v921_v22 = vld [vmem:[#allocation4 + $0x10] sm:$0xff]  }
  0x39   :  { %791 = vmatpush3.bf16.msra.mxu0 %v899_v11  ;;  %822 = vmatprep.subr.bf16.mxu1 %v915_v23 }
  0x3a   :  { %840 = vmatprep.subr.bf16.mxu0 %v916_v24 }
  0x3c   :  { %793 = vmatmul.mubr.bf16.vlgmr.msra.gmra.mxu0 %v901_v14  ;;  %823 = vmatpush3.bf16.msra.mxu1 %v915_v23  ;;  %v922_v23 = vld [vmem:[#allocation4 + $0x8] sm:$0xff]  }
  0x3d   :  { %796 = vmatprep.mubr.bf16.mxu0 %v902_v15  ;;  %872 = vmatprep.subr.bf16.mxu1 %v916_v24 }
  0x3e   :  { %841 = vmatpush3.bf16.msra.mxu0 %v916_v24 }
  0x3f   :  { %842 = vmatprep.subr.bf16.mxu0 %v917_v25 }
  0x42   :  { %843 = vmatpush3.bf16.msra.mxu0 %v917_v25 }
  0x43   :  { %844 = vmatprep.subr.bf16.mxu0 %v918_v26 }
  0x44   :  { %797 = vmatmul.mubr.bf16.gmra.mxu0 %v903_v16 }
  0x45   :  { %800 = vmatprep.mubr.bf16.mxu0 %v904_v17 }
  0x46   :  { %845 = vmatpush3.bf16.msra.mxu0 %v918_v26 }
  0x47   :  { %846 = vmatprep.subr.bf16.mxu0 %v919_v27 }
  0x4a   :  { %847 = vmatpush3.bf16.msra.mxu0 %v919_v27 }
  0x4b   :  { %848 = vmatprep.subr.bf16.mxu0 %v1066_v28 }
  0x4c   :  { %801 = vmatmul.mubr.bf16.gmra.mxu0 %v905_v18 }
  0x4d   :  { %804 = vmatprep.mubr.bf16.mxu0 %v906_v19 }
  0x4e   :  { %849 = vmatpush3.bf16.msra.mxu0 %v1066_v28 }
  0x4f   :  { %850 = vmatprep.subr.bf16.mxu0 %v921_v22 }
  0x52   :  { %851 = vmatpush3.bf16.msra.mxu0 %v921_v22 }
  0x53   :  { %852 = vmatprep.subr.bf16.mxu0 %v922_v23 }
  0x54   :  { %805 = vmatmul.mubr.bf16.gmra.mxu0 %v907_v20 }
  0x56   :  { %853 = vmatpush3.bf16.msra.mxu0 %v922_v23 }
  0xfc   :  { %v794_v29 = vpop.f32.mrf.mxu0 }
  0xfd   :  { %v233_v35 = vadd.f32 %v794_v29, %v693_v31 }
  0xfe   :  { %v224_v30 = vpop.f32.mrf.mxu0 }
  0xff   :  { %v225_v33 = vadd.f32 %v693_v31, %v224_v30  ;;  %v289_v42 = vmax.f32 %v233_v35, 0.0 }
 0x100   :  { %v795_v32 = vpop.f32.mrf.mxu0 }
 0x101   :  { %v236_v34 = vadd.f32 %v795_v32, %v693_v31  ;;  %v287_v40 = vmax.f32 %v225_v33, 0.0 }
 0x102   :  { %v227_v36 = vpop.f32.mrf.mxu0 }
 0x103   :  { %v228_v37 = vadd.f32 %v693_v31, %v227_v36  ;;  %v290_v38 = vmax.f32 %v236_v34, 0.0 }
 0x104   :  { %v798_v39 = vpop.f32.mrf.mxu0 }
 0x105   :  { %v288_v41 = vmax.f32 %v228_v37, 0.0  ;;  %v304_v45 = vpack.c.bf16 %v290_v38, %v289_v42  ;;  %v249_v49 = vadd.f32 %v798_v39, %v693_v31 }
 0x106   :  { %v240_v43 = vpop.f32.mrf.mxu0 }
 0x107   :  { %v303_v44 = vpack.c.bf16 %v288_v41, %v287_v40  ;;  %v241_v47 = vadd.f32 %v693_v31, %v240_v43  ;;  %v293_v56 = vmax.f32 %v249_v49, 0.0 }
 0x108   :  { %v799_v46 = vpop.f32.mrf.mxu0 }
 0x109   :  { %v252_v48 = vadd.f32 %v799_v46, %v693_v31  ;;  %824 = vmatprep.mubr.bf16.mxu1 %v303_v44  ;;  %v291_v54 = vmax.f32 %v241_v47, 0.0 }
 0x10a   :  { %v243_v50 = vpop.f32.mrf.mxu0  ;;  %825 = vmatmul.mubr.bf16.vlgmr.msra.gmra.mxu1 %v304_v45 }
 0x10b   :  { %v244_v51 = vadd.f32 %v693_v31, %v243_v50  ;;  %880 = vmatpush3.bf16.msra.mxu1 %v916_v24  ;;  %v294_v52 = vmax.f32 %v252_v48, 0.0  ;;  %v923_v24 = vld [vmem:[#allocation4] sm:$0xff]  }
 0x10c   :  { %v802_v53 = vpop.f32.mrf.mxu0  ;;  %873 = vmatprep.subr.bf16.mxu1 %v917_v25  ;;  %854 = vmatprep.subr.bf16.mxu0 %v923_v24 }
 0x10d   :  { %v292_v55 = vmax.f32 %v244_v51, 0.0  ;;  %v306_v59 = vpack.c.bf16 %v294_v52, %v293_v56  ;;  %v265_v63 = vadd.f32 %v802_v53, %v693_v31  ;;  %855 = vmatpush3.bf16.msra.mxu0 %v923_v24 }
 0x10e   :  { %v256_v57 = vpop.f32.mrf.mxu0 }
 0x10f   :  { %v305_v58 = vpack.c.bf16 %v292_v55, %v291_v54  ;;  %881 = vmatpush3.bf16.msra.mxu1 %v917_v25  ;;  %v257_v61 = vadd.f32 %v693_v31, %v256_v57  ;;  %v297_v6 = vmax.f32 %v265_v63, 0.0 }
 0x110   :  { %v803_v60 = vpop.f32.mrf.mxu0  ;;  %874 = vmatprep.subr.bf16.mxu1 %v918_v26 }
 0x111   :  { %v268_v62 = vadd.f32 %v803_v60, %v693_v31  ;;  %828 = vmatprep.mubr.bf16.mxu1 %v305_v58  ;;  %v295_v4 = vmax.f32 %v257_v61, 0.0 }
 0x112   :  { %v259_v0 = vpop.f32.mrf.mxu0  ;;  %829 = vmatmul.mubr.bf16.gmra.mxu1 %v306_v59 }
 0x113   :  { %v260_v1 = vadd.f32 %v693_v31, %v259_v0  ;;  %882 = vmatpush3.bf16.msra.mxu1 %v918_v26  ;;  %v298_v2 = vmax.f32 %v268_v62, 0.0 }
 0x114   :  { %v806_v3 = vpop.f32.mrf.mxu0  ;;  %875 = vmatprep.subr.bf16.mxu1 %v919_v27 }
 0x115   :  { %v296_v5 = vmax.f32 %v260_v1, 0.0  ;;  %v308_v9 = vpack.c.bf16 %v298_v2, %v297_v6  ;;  %v281_v13 = vadd.f32 %v806_v3, %v693_v31 }
 0x116   :  { %v272_v7 = vpop.f32.mrf.mxu0 }
 0x117   :  { %v307_v8 = vpack.c.bf16 %v296_v5, %v295_v4  ;;  %883 = vmatpush3.bf16.msra.mxu1 %v919_v27  ;;  %v273_v11 = vadd.f32 %v693_v31, %v272_v7  ;;  %v301_v19 = vmax.f32 %v281_v13, 0.0  ;;  %v710_v27 = vld [vmem:[%s1133_s4] ss:$0 sm:$0xff] }
 0x118   :  { %v807_v10 = vpop.f32.mrf.mxu0  ;;  %876 = vmatprep.subr.bf16.mxu1 %v1066_v28 }
 0x119   :  { %v284_v12 = vadd.f32 %v807_v10, %v693_v31  ;;  %832 = vmatprep.mubr.bf16.mxu1 %v307_v8  ;;  %v299_v17 = vmax.f32 %v273_v11, 0.0 }
 0x11a   :  { %v275_v14 = vpop.f32.mrf.mxu0  ;;  %833 = vmatmul.mubr.bf16.gmra.mxu1 %v308_v9 }
 0x11b   :  { %v276_v15 = vadd.f32 %v693_v31, %v275_v14  ;;  %884 = vmatpush3.bf16.msra.mxu1 %v1066_v28  ;;  %v302_v16 = vmax.f32 %v284_v12, 0.0 }
 0x11c   :  { %877 = vmatprep.subr.bf16.mxu1 %v921_v22 }
 0x11d   :  { %v300_v18 = vmax.f32 %v276_v15, 0.0  ;;  %v310_v21 = vpack.c.bf16 %v302_v16, %v301_v19 }
 0x11f   :  { %v309_v20 = vpack.c.bf16 %v300_v18, %v299_v17  ;;  %885 = vmatpush3.bf16.msra.mxu1 %v921_v22  ;;  %v719_v18 = vld [vmem:[%s1135_s6] ss:$0 sm:$0xff] }
 0x120   :  { %878 = vmatprep.subr.bf16.mxu1 %v922_v23 }
 0x121   :  { %836 = vmatprep.mubr.bf16.mxu1 %v309_v20 }
 0x122   :  { %837 = vmatmul.mubr.bf16.gmra.mxu1 %v310_v21 }
 0x123   :  { %886 = vmatpush3.bf16.msra.mxu1 %v922_v23 }
 0x124   :  { %879 = vmatprep.subr.bf16.mxu1 %v923_v24 }
 0x127   :  { %887 = vmatpush3.bf16.msra.mxu1 %v923_v24 }
 0x1ca   :  { %v826_v25 = vpop.f32.mrf.mxu1 }
 0x1cb   :  { %v425_v31 = vadd.f32 %v826_v25, %v710_v27 }
 0x1cc   :  { %v416_v26 = vpop.f32.mrf.mxu1 }
 0x1cd   :  { %v417_v29 = vadd.f32 %v710_v27, %v416_v26  ;;  %v481_v38 = vmax.f32 %v425_v31, 0.0 }
 0x1ce   :  { %v827_v28 = vpop.f32.mrf.mxu1 }
 0x1cf   :  { %v428_v30 = vadd.f32 %v827_v28, %v710_v27  ;;  %v479_v36 = vmax.f32 %v417_v29, 0.0 }
 0x1d0   :  { %v419_v32 = vpop.f32.mrf.mxu1 }
 0x1d1   :  { %v420_v33 = vadd.f32 %v710_v27, %v419_v32  ;;  %v482_v34 = vmax.f32 %v428_v30, 0.0 }
 0x1d2   :  { %v830_v35 = vpop.f32.mrf.mxu1 }
 0x1d3   :  { %v480_v37 = vmax.f32 %v420_v33, 0.0  ;;  %v496_v41 = vpack.c.bf16 %v482_v34, %v481_v38  ;;  %v441_v45 = vadd.f32 %v830_v35, %v710_v27 }
 0x1d4   :  { %v432_v39 = vpop.f32.mrf.mxu1 }
 0x1d5   :  { %v495_v40 = vpack.c.bf16 %v480_v37, %v479_v36  ;;  %v433_v43 = vadd.f32 %v710_v27, %v432_v39  ;;  %v485_v52 = vmax.f32 %v441_v45, 0.0 }
 0x1d6   :  { %v831_v42 = vpop.f32.mrf.mxu1 }
 0x1d7   :  { %v444_v44 = vadd.f32 %v831_v42, %v710_v27  ;;  %856 = vmatprep.mubr.bf16.mxu0 %v495_v40  ;;  %v483_v50 = vmax.f32 %v433_v43, 0.0 }
 0x1d8   :  { %v435_v46 = vpop.f32.mrf.mxu1  ;;  %857 = vmatmul.mubr.bf16.vlgmr.msra.gmra.mxu0 %v496_v41 }
 0x1d9   :  { %v436_v47 = vadd.f32 %v710_v27, %v435_v46  ;;  %v486_v48 = vmax.f32 %v444_v44, 0.0 }
 0x1da   :  { %v834_v49 = vpop.f32.mrf.mxu1 }
 0x1db   :  { %v484_v51 = vmax.f32 %v436_v47, 0.0  ;;  %v498_v55 = vpack.c.bf16 %v486_v48, %v485_v52  ;;  %v457_v59 = vadd.f32 %v834_v49, %v710_v27 }
 0x1dc   :  { %v448_v53 = vpop.f32.mrf.mxu1 }
 0x1dd   :  { %v497_v54 = vpack.c.bf16 %v484_v51, %v483_v50  ;;  %v449_v57 = vadd.f32 %v710_v27, %v448_v53  ;;  %v489_v2 = vmax.f32 %v457_v59, 0.0 }
 0x1de   :  { %v835_v56 = vpop.f32.mrf.mxu1 }
 0x1df   :  { %v460_v58 = vadd.f32 %v835_v56, %v710_v27  ;;  %860 = vmatprep.mubr.bf16.mxu0 %v497_v54  ;;  %v487_v0 = vmax.f32 %v449_v57, 0.0 }
 0x1e0   :  { %v451_v60 = vpop.f32.mrf.mxu1  ;;  %861 = vmatmul.mubr.bf16.gmra.mxu0 %v498_v55 }
 0x1e1   :  { %v452_v61 = vadd.f32 %v710_v27, %v451_v60  ;;  %v490_v62 = vmax.f32 %v460_v58, 0.0 }
 0x1e2   :  { %v838_v63 = vpop.f32.mrf.mxu1 }
 0x1e3   :  { %v488_v1 = vmax.f32 %v452_v61, 0.0  ;;  %v500_v5 = vpack.c.bf16 %v490_v62, %v489_v2  ;;  %v473_v9 = vadd.f32 %v838_v63, %v710_v27 }
 0x1e4   :  { %v464_v3 = vpop.f32.mrf.mxu1 }
 0x1e5   :  { %v499_v4 = vpack.c.bf16 %v488_v1, %v487_v0  ;;  %v465_v7 = vadd.f32 %v710_v27, %v464_v3  ;;  %v493_v15 = vmax.f32 %v473_v9, 0.0 }
 0x1e6   :  { %v839_v6 = vpop.f32.mrf.mxu1 }
 0x1e7   :  { %v476_v8 = vadd.f32 %v839_v6, %v710_v27  ;;  %864 = vmatprep.mubr.bf16.mxu1 %v499_v4  ;;  %v491_v13 = vmax.f32 %v465_v7, 0.0 }
 0x1e8   :  { %v467_v10 = vpop.f32.mrf.mxu1  ;;  %865 = vmatmul.mubr.bf16.vlgmr.msra.gmra.mxu1 %v500_v5 }
 0x1e9   :  { %v468_v11 = vadd.f32 %v710_v27, %v467_v10  ;;  %v494_v12 = vmax.f32 %v476_v8, 0.0 }
 0x1eb   :  { %v492_v14 = vmax.f32 %v468_v11, 0.0  ;;  %v502_v17 = vpack.c.bf16 %v494_v12, %v493_v15 }
 0x1ed   :  { %v501_v16 = vpack.c.bf16 %v492_v14, %v491_v13 }
 0x1ef   :  { %868 = vmatprep.mubr.bf16.mxu1 %v501_v16 }
 0x1f0   :  { %869 = vmatmul.mubr.bf16.gmra.mxu1 %v502_v17 }
 0x298   :  { %v858_v19 = vpop.f32.mrf.mxu0 }
 0x299   :  { %v617_v20 = vadd.f32 %v858_v19, %v719_v18 }
 0x29a   :  { %v608_v21 = vpop.f32.mrf.mxu0 }
 0x29b   :  { %673 = vst [vmem:[%s1136_s7 + $0x10] sm:$0xff] %v617_v20  ;;  %v609_v22 = vadd.f32 %v719_v18, %v608_v21 }
 0x29c   :  { %v859_v23 = vpop.f32.mrf.mxu0 }
 0x29d   :  { %671 = vst [vmem:[%s1136_s7] sm:$0xff] %v609_v22  ;;  %v620_v24 = vadd.f32 %v859_v23, %v719_v18 }
 0x29e   :  { %v611_v25 = vpop.f32.mrf.mxu0 }
 0x29f   :  { %674 = vst [vmem:[%s1136_s7 + $0x18] sm:$0xff] %v620_v24  ;;  %v612_v26 = vadd.f32 %v719_v18, %v611_v25 }
 0x2a0   :  { %v862_v27 = vpop.f32.mrf.mxu0 }
 0x2a1   :  { %672 = vst [vmem:[%s1136_s7 + $0x8] sm:$0xff] %v612_v26  ;;  %v633_v28 = vadd.f32 %v862_v27, %v719_v18 }
 0x2a2   :  { %v624_v29 = vpop.f32.mrf.mxu0 }
 0x2a3   :  { %677 = vst [vmem:[%s1136_s7 + $0x30] sm:$0xff] %v633_v28  ;;  %v625_v30 = vadd.f32 %v719_v18, %v624_v29 }
 0x2a4   :  { %v863_v31 = vpop.f32.mrf.mxu0 }
 0x2a5   :  { %675 = vst [vmem:[%s1136_s7 + $0x20] sm:$0xff] %v625_v30  ;;  %v636_v32 = vadd.f32 %v863_v31, %v719_v18 }
 0x2a6   :  { %v627_v33 = vpop.f32.mrf.mxu0 }
 0x2a7   :  { %678 = vst [vmem:[%s1136_s7 + $0x38] sm:$0xff] %v636_v32  ;;  %v628_v34 = vadd.f32 %v719_v18, %v627_v33 }
 0x2a8   :  { %v866_v35 = vpop.f32.mrf.mxu1 }
 0x2a9   :  { %676 = vst [vmem:[%s1136_s7 + $0x28] sm:$0xff] %v628_v34  ;;  %v649_v36 = vadd.f32 %v866_v35, %v719_v18 }
 0x2aa   :  { %v640_v37 = vpop.f32.mrf.mxu1 }
 0x2ab   :  { %681 = vst [vmem:[%s1136_s7 + $0x50] sm:$0xff] %v649_v36  ;;  %v641_v38 = vadd.f32 %v719_v18, %v640_v37 }
 0x2ac   :  { %v867_v39 = vpop.f32.mrf.mxu1 }
 0x2ad   :  { %679 = vst [vmem:[%s1136_s7 + $0x40] sm:$0xff] %v641_v38  ;;  %v652_v40 = vadd.f32 %v867_v39, %v719_v18 }
 0x2ae   :  { %v643_v41 = vpop.f32.mrf.mxu1 }
 0x2af   :  { %682 = vst [vmem:[%s1136_s7 + $0x58] sm:$0xff] %v652_v40  ;;  %v644_v42 = vadd.f32 %v719_v18, %v643_v41 }
 0x2b0   :  { %v870_v43 = vpop.f32.mrf.mxu1 }
 0x2b1   :  { %680 = vst [vmem:[%s1136_s7 + $0x48] sm:$0xff] %v644_v42  ;;  %v665_v44 = vadd.f32 %v870_v43, %v719_v18 }
 0x2b2   :  { %v656_v45 = vpop.f32.mrf.mxu1 }
 0x2b3   :  { %685 = vst [vmem:[%s1136_s7 + $0x70] sm:$0xff] %v665_v44  ;;  %v657_v46 = vadd.f32 %v719_v18, %v656_v45 }
 0x2b4   :  { %v871_v47 = vpop.f32.mrf.mxu1 }
 0x2b5   :  { %683 = vst [vmem:[%s1136_s7 + $0x60] sm:$0xff] %v657_v46  ;;  %v668_v48 = vadd.f32 %v871_v47, %v719_v18 }
 0x2b6   :  { %v659_v49 = vpop.f32.mrf.mxu1 }
 0x2b7   :  { %686 = vst [vmem:[%s1136_s7 + $0x78] sm:$0xff] %v668_v48  ;;  %v660_v50 = vadd.f32 %v719_v18, %v659_v49 }
 0x2b9   :  { %684 = vst [vmem:[%s1136_s7 + $0x68] sm:$0xff] %v660_v50 }
 0x2ba   :  { %691 = vsyncpa [#allocation3], 1 }
 0x2bb   :  { %692 = vsyncpa [#allocation5], 1 }

</bundles_post_ra>
